<compile_context>
chip_gen: v5e
topology: v5e:2x2
jax: 0.10.0
libtpu: 0.0.40
codegen_flags: <defaults>
</compile_context>

<pallas_src>
import functools

import jax
import jax.numpy as jnp
from jax import lax
from jax.experimental import pallas as pl
from jax.experimental.pallas import tpu as pltpu

# Problem sizes (the original script defines m, n, p, k as globals; keep them small).
M, N, P, K = 4, 4, 4, 32
BATCH = 256  # demo batch; tiled into 128-row blocks below


def _fedro_kernel(ab_ref, w1_ref, w3_ref, o_ref, *, k):
    """ab_ref: (tb, m*n + n*p); w1_ref: (2k, m*n + n*p); w3_ref: (m*p, k)."""
    # Fused first layer: [h1 | h2] = ab @ W1_packed^T (one MXU push instead of two).
    # Contract the last axis of the activations against the last ("in") axis of the
    # PyTorch-layout weight -> no wrapper transposes needed.
    h = lax.dot_general(
        ab_ref[...], w1_ref[...],
        dimension_numbers=(((1,), (1,)), ((), ())),
        preferred_element_type=jnp.float32,
    )                                   # (tb, 2k), f32 accumulation
    prod = h[:, :k] * h[:, k:]          # elementwise product stays in f32 (VPU)

    # Final layer: out = (h1*h2) @ W3^T. Cast the product to the weight dtype so the
    # bf16 MXU fast path is used when compute_dtype=bf16; accumulate in f32.
    out = lax.dot_general(
        prod.astype(w3_ref.dtype), w3_ref[...],
        dimension_numbers=(((1,), (1,)), ((), ())),
        preferred_element_type=jnp.float32,
    )                                   # (tb, m*p)
    o_ref[...] = out.astype(o_ref.dtype)


def matmul_fedro_forward(a, b, w11, w12, w3, *, m=M, n=N, p=P, k=K,
                         batch_tile=128, compute_dtype=None):
    """a: (..., m, n), b: (..., n, p); weights in PyTorch (out, in) layout."""
    out_dtype = a.dtype
    a2 = a.reshape(-1, m * n)
    b2 = b.reshape(-1, n * p)
    batch = a2.shape[0]

    cdt = jnp.dtype(compute_dtype) if compute_dtype is not None else jnp.dtype(a2.dtype)
    a2 = a2.astype(cdt)
    b2 = b2.astype(cdt)
    w11c = w11.astype(cdt)
    w12c = w12.astype(cdt)
    w3c = w3.astype(cdt)

    # One fused activation operand: [a | b], contraction axis last.
    ab = jnp.concatenate([a2, b2], axis=-1)                 # (batch, m*n + n*p)

    # Block-diagonal packed first-layer weight, kept in (out, in) layout.
    in_dim = m * n + n * p
    w1 = jnp.zeros((2 * k, in_dim), cdt)
    w1 = w1.at[:k, : m * n].set(w11c)
    w1 = w1.at[k:, m * n :].set(w12c)

    # Batch tiling: multiple-of-8 tiles (or the full batch) so blocks are legal and
    # the pipeline double-buffers; pad the batch if it does not divide evenly.
    tb = min(batch_tile, batch)
    if tb != batch:
        tb = max(8, (tb // 8) * 8)
    pad = (-batch) % tb
    if pad:
        ab = jnp.pad(ab, ((0, pad), (0, 0)))
    padded = batch + pad
    grid = (padded // tb,)

    # VMEM budget (double-buffered activation/output tiles + resident weights),
    # clamped well below v7x's 64 MiB physical VMEM.
    item_c = jnp.dtype(cdt).itemsize
    item_o = jnp.dtype(out_dtype).itemsize
    vmem_needed = (
        2 * tb * in_dim * item_c
        + 2 * tb * m * p * item_o
        + 2 * (w1.size + w3c.size) * item_c
    )
    vmem_limit = int(min(max(4 * vmem_needed, 16 << 20), 48 << 20))

    flops = 2 * padded * (m * n * k + n * p * k + k * m * p)
    bytes_accessed = (
        (ab.size + w1.size + w3c.size) * item_c + padded * m * p * item_o
    )

    kernel = functools.partial(_fedro_kernel, k=k)
    out = pl.pallas_call(
        kernel,
        out_shape=jax.ShapeDtypeStruct((padded, m * p), out_dtype),
        grid_spec=pltpu.PrefetchScalarGridSpec(
            num_scalar_prefetch=0,
            grid=grid,
            in_specs=[
                pl.BlockSpec((tb, in_dim), lambda i: (i, 0)),      # [a | b] tile
                pl.BlockSpec((2 * k, in_dim), lambda i: (0, 0)),   # packed W1 (resident)
                pl.BlockSpec((m * p, k), lambda i: (0, 0)),        # W3 (resident)
            ],
            out_specs=pl.BlockSpec((tb, m * p), lambda i: (i, 0)),
        ),
        compiler_params=pltpu.CompilerParams(
            dimension_semantics=("parallel",),
            vmem_limit_bytes=vmem_limit,
        ),
        cost_estimate=pl.CostEstimate(
            flops=flops, transcendentals=0, bytes_accessed=bytes_accessed
        ),
    )(ab, w1, w3c)

    return out[:batch]


def reference_forward(a, b, w11, w12, w3):
    a2 = a.reshape(-1, M * N)
    b2 = b.reshape(-1, N * P)
    hi = lax.Precision.HIGHEST
    h1 = jnp.dot(a2, w11.T, precision=hi)
    h2 = jnp.dot(b2, w12.T, precision=hi)
    return jnp.dot(h1 * h2, w3.T, precision=hi)


if __name__ == "__main__":
    key = jax.random.PRNGKey(0)
    k_a, k_b, k_w11, k_w12, k_w3 = jax.random.split(key, 5)

    # Deterministic parameters (shapes match nn.Linear(out, in) weights).
    w11 = jax.random.normal(k_w11, (K, M * N), dtype=jnp.float32) * 0.1
    w12 = jax.random.normal(k_w12, (K, N * P), dtype=jnp.float32) * 0.1
    w3 = jax.random.normal(k_w3, (M * P, K), dtype=jnp.float32) * 0.1

    # Inputs: batched (m, n) and (n, p) matrices, flattened inside forward.
    a = jax.random.normal(k_a, (BATCH, M, N), dtype=jnp.float32)
    b = jax.random.normal(k_b, (BATCH, N, P), dtype=jnp.float32)

    ref = reference_forward(a, b, w11, w12, w3)

    # f32 compute path (default): tight check against the reference.
    out_f32 = jax.block_until_ready(matmul_fedro_forward(a, b, w11, w12, w3))
    assert out_f32.shape == (BATCH, M * P), out_f32.shape
    assert jnp.allclose(out_f32, ref, atol=1e-3, rtol=1e-3), "f32 kernel mismatch"

    # bf16 matmul path (v6e/v7x MXU fast path; elementwise product stays f32).
    out_bf16 = jax.block_until_ready(
        matmul_fedro_forward(a, b, w11, w12, w3, compute_dtype=jnp.bfloat16)
    )
    assert out_bf16.shape == (BATCH, M * P), out_bf16.shape
    assert float(jnp.max(jnp.abs(out_bf16 - ref))) < 5e-2, "bf16 kernel mismatch"

    print("KERNEL_OK")
</pallas_src>

<mosaic_0001>
module attributes {stable_mosaic.version = 11 : i64} {
  func.func @_fedro_kernel(%arg0: i32, %arg1: memref<128x32xf32, #tpu.memory_space<vmem>>, %arg2: memref<64x32xf32, #tpu.memory_space<vmem>>, %arg3: memref<16x32xf32, #tpu.memory_space<vmem>>, %arg4: memref<128x16xf32, #tpu.memory_space<vmem>>) attributes {dimension_semantics = [#tpu.dimension_semantics<parallel>], iteration_bounds = array<i64: 2>, scalar_prefetch = 0 : i64, scratch_operands = 0 : i64, tpu.core_type = #tpu.core_type<tc>, window_params = [{transform_indices = @transform_0, window_bounds = array<i64: 128, 32>}, {pipeline_mode = #tpu.pipeline_mode<synchronous>, transform_indices = @transform_1, window_bounds = array<i64: 64, 32>}, {pipeline_mode = #tpu.pipeline_mode<synchronous>, transform_indices = @transform_2, window_bounds = array<i64: 16, 32>}, {transform_indices = @transform_3, window_bounds = array<i64: 128, 16>}]} {
    %c0 = arith.constant 0 : index
    %c0_0 = arith.constant 0 : index
    %0 = vector.load %arg1[%c0, %c0_0] : memref<128x32xf32, #tpu.memory_space<vmem>>, vector<128x32xf32>
    %c0_1 = arith.constant 0 : index
    %c0_2 = arith.constant 0 : index
    %1 = vector.load %arg2[%c0_1, %c0_2] : memref<64x32xf32, #tpu.memory_space<vmem>>, vector<64x32xf32>
    %cst = arith.constant dense<0.000000e+00> : vector<128x64xf32>
    %2 = tpu.matmul %0, %1, %cst {dimension_numbers = #tpu.dot_dimension_numbers<[1], [1], [0], [0], [0, 0, 1, 0], [], []>} : vector<128x32xf32>, vector<64x32xf32>, vector<128x64xf32> -> vector<128x64xf32>
    %3 = vector.extract_strided_slice %2 {offsets = [0, 0], sizes = [128, 32], strides = [1, 1]} : vector<128x64xf32> to vector<128x32xf32>
    %4 = vector.extract_strided_slice %2 {offsets = [0, 32], sizes = [128, 32], strides = [1, 1]} : vector<128x64xf32> to vector<128x32xf32>
    %5 = arith.mulf %3, %4 : vector<128x32xf32>
    %c0_3 = arith.constant 0 : index
    %c0_4 = arith.constant 0 : index
    %6 = vector.load %arg3[%c0_3, %c0_4] : memref<16x32xf32, #tpu.memory_space<vmem>>, vector<16x32xf32>
    %cst_5 = arith.constant dense<0.000000e+00> : vector<128x16xf32>
    %7 = tpu.matmul %5, %6, %cst_5 {dimension_numbers = #tpu.dot_dimension_numbers<[1], [1], [0], [0], [0, 0, 1, 0], [], []>} : vector<128x32xf32>, vector<16x32xf32>, vector<128x16xf32> -> vector<128x16xf32>
    %c0_6 = arith.constant 0 : index
    %c0_7 = arith.constant 0 : index
    %8 = vector.load %arg4[%c0_6, %c0_7] : memref<128x16xf32, #tpu.memory_space<vmem>>, vector<128x16xf32>
    tpu.vector_store %arg4[%c0_6, %c0_7], %7 {strides = array<i32>} : memref<128x16xf32, #tpu.memory_space<vmem>>, vector<128x16xf32>,
    return
  }
  func.func @transform_0(%arg0: i32) -> (i32, i32) {
    %c0_i32 = arith.constant 0 : i32
    %c0_i32_0 = arith.constant 0 : i32
    return %arg0, %c0_i32 : i32, i32
  }
  func.func @transform_1(%arg0: i32) -> (i32, i32) {
    %c0_i32 = arith.constant 0 : i32
    %c0_i32_0 = arith.constant 0 : i32
    %c0_i32_1 = arith.constant 0 : i32
    return %c0_i32, %c0_i32_0 : i32, i32
  }
  func.func @transform_2(%arg0: i32) -> (i32, i32) {
    %c0_i32 = arith.constant 0 : i32
    %c0_i32_0 = arith.constant 0 : i32
    %c0_i32_1 = arith.constant 0 : i32
    return %c0_i32, %c0_i32_0 : i32, i32
  }
  func.func @transform_3(%arg0: i32) -> (i32, i32) {
    %c0_i32 = arith.constant 0 : i32
    %c0_i32_0 = arith.constant 0 : i32
    return %arg0, %c0_i32 : i32, i32
  }
}

</mosaic_0001>

<bundles_post_ra>
// kernel: tpu_custom_call.1
= control target key start
LH: loop header
LB: loop body
LE: loop exit
PB: predicated region body
PF: predicated region fallthrough
CT: control target
= control target key end

     0   :  { %s719_s12 = smov 0   ;;  %s913_s0 = inlined_call_operand.vmem [shape: f32[256,32], index: 0, kind: input, shape index: {}]   ;;  %s914_s1 = inlined_call_operand.vmem [shape: f32[64,32], index: 1, kind: input, shape index: {}]   ;;  %s915_s2 = inlined_call_operand.vmem [shape: f32[16,32], index: 2, kind: input, shape index: {}]   ;;  %s916_s3 = inlined_call_operand.vmem [shape: f32[256,16], index: 3, kind: output, shape index: {}]  }
   0x1 LB: > { %s610_s13 = sadd.s32 4294967295, %s696_s12   ;;  %p614_p0 = scmp.ge.s32.totalorder %s696_s12, 1  ;;  %s696_s12 = sphi %s719_s12, %s13_s12  }
   0x2   : > { %p138_p1 = scmp.lt.s32.totalorder %s696_s12, 3 }
   0x4   : > { %p139_p2 = pnand %p614_p0, %p138_p1 }
   0x5   : > { %s615_s22 = sshll.u32 (!%p139_p2), %s610_s13, 4  ;;  %s698_s8 = smov (!%p139_p2), 96  }
   0x6   : > { %142 = sbr.rel (%p139_p2) target bundleno = 490 (0x1ea), region = 32  ;;  %p163_p3 = scmp.lt.s32.totalorder (!%p139_p2), %s615_s22, 31 }
   0xb   : > { %v197_v0 = vld [vmem:[%s914_s1 + $0x38] sm:$0xff]  ;;  %vm198_vm0 = vcmask 261120   ;;  %v196_v1 = vld [vmem:[%s914_s1 + $0x30] sm:$0xff]  ;;  %v195_v2 = vld [vmem:[%s914_s1 + $0x28] sm:$0xff]  ;;  %s918_s22 = smov (!%p163_p3, %s615_s22), 31  ;;  %vm537_vm1 = vcmask 130048  }
   0xc   : > { %619 = vmatpush.xpose.msk.msra.mxu0 %vm198_vm0, %v197_v0  ;;  %663 = vmatpush.xpose.msk.msra.mxu2 %vm198_vm0, %v197_v0  ;;  %v194_v3 = vld [vmem:[%s914_s1 + $0x20] sm:$0xff]  ;;  %v193_v4 = vld [vmem:[%s914_s1 + $0x18] sm:$0xff]  ;;  %v192_v5 = vld [vmem:[%s914_s1 + $0x10] sm:$0xff]  ;;  %s616_s29 = sshll.u32 %s918_s22, 3 }
   0xd   : > { %664 = vmatpush.xpose.msk.msra.mxu3 %vm198_vm0, %v197_v0  ;;  %v191_v6 = vld [vmem:[%s914_s1 + $0x8] sm:$0xff]  ;;  %v190_v7 = vld [vmem:[%s914_s1] sm:$0xff]  ;;  %s779_s7 = scalar_lea.vmem %s913_s0, %s616_s29  ;;  %s876_s16 = scalar_lea.vmem %s916_s3, %s616_s29 }
   0xe   : > { %v174_v8 = vld [vmem:[%s779_s7] sm:$0xff]  ;;  %v181_v9 = vld [vmem:[%s779_s7 + $0x38] sm:$0xff]  ;;  %v175_v10 = vld [vmem:[%s779_s7 + $0x8] sm:$0xff] }
   0xf   : > { %v182_v11 = vld [vmem:[%s779_s7 + $0x40] sm:$0xff]  ;;  %v176_v12 = vld [vmem:[%s779_s7 + $0x10] sm:$0xff]  ;;  %v183_v13 = vld [vmem:[%s779_s7 + $0x48] sm:$0xff] }
  0x10   : > { %620 = vmatpush.xpose.msk.msra.mxu0 %vm198_vm0, %v196_v1  ;;  %665 = vmatpush.xpose.msk.msra.mxu2 %vm198_vm0, %v196_v1  ;;  %v177_v14 = vld [vmem:[%s779_s7 + $0x18] sm:$0xff]  ;;  %v184_v15 = vld [vmem:[%s779_s7 + $0x50] sm:$0xff]  ;;  %v178_v17 = vld [vmem:[%s779_s7 + $0x20] sm:$0xff] }
  0x11   : > { %666 = vmatpush.xpose.msk.msra.mxu3 %vm198_vm0, %v196_v1  ;;  %v189_v16 = vld [vmem:[%s779_s7 + $0x78] sm:$0xff]  ;;  %v179_v19 = vld [vmem:[%s779_s7 + $0x28] sm:$0xff]  ;;  %v186_v20 = vld [vmem:[%s779_s7 + $0x60] sm:$0xff] }
  0x12   : > { %v185_v18 = vld [vmem:[%s779_s7 + $0x58] sm:$0xff]  ;;  %v180_v21 = vld [vmem:[%s779_s7 + $0x30] sm:$0xff]  ;;  %v187_v22 = vld [vmem:[%s779_s7 + $0x68] sm:$0xff] }
  0x13   : > { %v188_v23 = vld [vmem:[%s779_s7 + $0x70] sm:$0xff]  ;;  %v417_v35 = vld [vmem:[%s915_s2 + $0x8] sm:$0xff]  ;;  %v416_v36 = vld [vmem:[%s915_s2] sm:$0xff] }
  0x14   : > { %621 = vmatpush.xpose.msk.msra.mxu0 %vm198_vm0, %v195_v2  ;;  %667 = vmatpush.xpose.msk.msra.mxu2 %vm198_vm0, %v195_v2 }
  0x15   : > { %668 = vmatpush.xpose.msk.msra.mxu3 %vm198_vm0, %v195_v2  ;;  %643 = vmatpush.xpose.msk.msra.mxu1 %vm198_vm0, %v417_v35 }
  0x18   : > { %622 = vmatpush.xpose.msk.msra.mxu0 %vm198_vm0, %v194_v3  ;;  %669 = vmatpush.xpose.msk.msra.mxu2 %vm198_vm0, %v194_v3 }
  0x19   : > { %670 = vmatpush.xpose.msk.msra.mxu3 %vm198_vm0, %v194_v3  ;;  %644 = vmatpush.xpose.msk.msra.mxu1 %vm198_vm0, %v416_v36 }
  0x1c   : > { %623 = vmatpush.xpose.msk.msra.mxu0 %vm198_vm0, %v193_v4  ;;  %671 = vmatpush.xpose.msk.msra.mxu2 %vm198_vm0, %v193_v4 }
  0x1d   : > { %672 = vmatpush.xpose.msk.msra.mxu3 %vm198_vm0, %v193_v4 }
  0x20   : > { %624 = vmatpush.xpose.msk.msra.mxu0 %vm198_vm0, %v192_v5  ;;  %673 = vmatpush.xpose.msk.msra.mxu2 %vm198_vm0, %v192_v5 }
  0x21   : > { %674 = vmatpush.xpose.msk.msra.mxu3 %vm198_vm0, %v192_v5 }
  0x24   : > { %625 = vmatpush.xpose.msk.msra.mxu0 %vm198_vm0, %v191_v6  ;;  %675 = vmatpush.xpose.msk.msra.mxu2 %vm198_vm0, %v191_v6 }
  0x25   : > { %676 = vmatpush.xpose.msk.msra.mxu3 %vm198_vm0, %v191_v6 }
  0x28   : > { %626 = vmatpush.xpose.msk.msra.mxu0 %vm198_vm0, %v190_v7  ;;  %677 = vmatpush.xpose.msk.msra.mxu2 %vm198_vm0, %v190_v7 }
  0x29   : > { %678 = vmatpush.xpose.msk.msra.mxu3 %vm198_vm0, %v190_v7 }
  0x2b   : > { %627 = vmatmul.msk.f32.vlgmr.msra.gmra.mxu0 %vm198_vm0, %v174_v8  ;;  %634 = vmatmul.msk.f32.vlgmr.msra.gmra.mxu2 %vm198_vm0, %v181_v9 }
  0x2c   : > { %642 = vmatmul.msk.f32.vlgmr.msra.gmra.mxu3 %vm198_vm0, %v189_v16 }
  0x2d   : > { %679 = vmatpush.xpose.msk.msrb.mxu3 %vm198_vm0, %v417_v35 }
  0x31   : > { %680 = vmatpush.xpose.msk.msrb.mxu3 %vm198_vm0, %v416_v36 }
  0x33   : > { %628 = vmatmul.msk.f32.gmra.mxu0 %vm198_vm0, %v175_v10  ;;  %635 = vmatmul.msk.f32.gmra.mxu2 %vm198_vm0, %v182_v11 }
  0x3b   : > { %629 = vmatmul.msk.f32.gmra.mxu0 %vm198_vm0, %v176_v12  ;;  %636 = vmatmul.msk.f32.gmra.mxu2 %vm198_vm0, %v183_v13 }
  0x43   : > { %630 = vmatmul.msk.f32.gmra.mxu0 %vm198_vm0, %v177_v14  ;;  %637 = vmatmul.msk.f32.gmra.mxu2 %vm198_vm0, %v184_v15 }
  0x4b   : > { %631 = vmatmul.msk.f32.gmra.mxu0 %vm198_vm0, %v178_v17  ;;  %638 = vmatmul.msk.f32.gmra.mxu2 %vm198_vm0, %v185_v18 }
  0x53   : > { %632 = vmatmul.msk.f32.gmra.mxu0 %vm198_vm0, %v179_v19  ;;  %639 = vmatmul.msk.f32.gmra.mxu2 %vm198_vm0, %v186_v20 }
  0x5b   : > { %633 = vmatmul.msk.f32.gmra.mxu0 %vm198_vm0, %v180_v21  ;;  %640 = vmatmul.msk.f32.gmra.mxu2 %vm198_vm0, %v187_v22 }
  0x63   : > { %641 = vmatmul.msk.f32.gmra.mxu2 %vm198_vm0, %v188_v23 }
  0xa8   : > { %v288_v24 = vpop.f32.mrf.mxu0 }
  0xa9   : > { %352 = vrot.lane.b32.xlu0 %v288_v24, %s698_s8 }
  0xae   : > { %v818_v25 = vpop.f32.mrf.mxu2 }
  0xaf   : > { %v333_v40 = vpop.f32.mrf.mxu3 }
  0xb0   : > { %v291_v26 = vpop.f32.mrf.mxu0 }
  0xb1   : > { %354 = vrot.lane.b32.xlu0 %v291_v26, %s698_s8 }
  0xb6   : > { %v821_v27 = vpop.f32.mrf.mxu2 }
  0xb8   : > { %v294_v28 = vpop.f32.mrf.mxu0 }
  0xb9   : > { %356 = vrot.lane.b32.xlu1 %v294_v28, %s698_s8 }
  0xbe   : > { %v824_v29 = vpop.f32.mrf.mxu2 }
  0xc0   : > { %v297_v30 = vpop.f32.mrf.mxu0 }
  0xc1   : > { %358 = vrot.lane.b32.xlu1 %v297_v30, %s698_s8 }
  0xc6   : > { %v318_v31 = vpop.f32.mrf.mxu2 }
  0xc7   : > { %372 = vrot.lane.b32.xlu2 %v318_v31, %s698_s8 }
  0xc8   : > { %v300_v32 = vpop.f32.mrf.mxu0 }
  0xce   : > { %v321_v33 = vpop.f32.mrf.mxu2 }
  0xcf   : > { %374 = vrot.lane.b32.xlu0 %v321_v33, %s698_s8  ;;  %360 = vrot.lane.b32.xlu2 %v300_v32, %s698_s8 }
  0xd0   : > { %v303_v34 = vpop.f32.mrf.mxu0 }
  0xd1   : > { %362 = vrot.lane.b32.xlu1 %v303_v34, %s698_s8 }
  0xd6   : > { %v324_v37 = vpop.f32.mrf.mxu2 }
  0xd7   : > { %376 = vrot.lane.b32.xlu2 %v324_v37, %s698_s8 }
  0xd8   : > { %v306_v38 = vpop.f32.mrf.mxu0 }
  0xd9   : > { %364 = vrot.lane.b32.xlu0 %v306_v38, %s698_s8 }
  0xde   : > { %v327_v39 = vpop.f32.mrf.mxu2 }
  0xdf   : > { %366 = vrot.lane.b32.xlu2 %v818_v25, %s698_s8  ;;  %378 = vrot.lane.b32.xlu1 %v327_v39, %s698_s8 }
  0xe6   : > { %v330_v41 = vpop.f32.mrf.mxu2 }
  0xe7   : > { %382 = vrot.lane.b32.xlu2 %v333_v40, %s698_s8  ;;  %368 = vrot.lane.b32.xlu1 %v821_v27, %s698_s8 }
  0xe8   : > { %380 = vrot.lane.b32.xlu0 %v330_v41, %s698_s8 }
  0xf0   : > { %370 = vrot.lane.b32.xlu0 %v824_v29, %s698_s8 }
 0x11b   : > { %v353_v42 = vpop.permute.xlu0 %352 }
 0x11c   : > { %v400_v43 = vmul.f32 %v353_v42, %v288_v24 }
 0x11e   : > { %645 = vmatmul.msk.f32.vlgmr.msra.gmra.mxu1 %vm198_vm0, %v400_v43 }
 0x121   : > { %v373_v44 = vpop.permute.xlu2 %372 }
 0x122   : > { %v410_v45 = vmul.f32 %v373_v44, %v318_v31 }
 0x123   : > { %v355_v46 = vpop.permute.xlu0 %354 }
 0x124   : > { %v401_v47 = vmul.f32 %v355_v46, %v291_v26  ;;  %655 = vmatmul.msk.f32.vlgmr.msrb.gmra.mxu3 %vm198_vm0, %v410_v45 }
 0x126   : > { %646 = vmatmul.msk.f32.gmra.mxu1 %vm198_vm0, %v401_v47 }
 0x129   : > { %v361_v52 = vpop.permute.xlu2 %360 }
 0x12a   : > { %v404_v53 = vmul.f32 %v361_v52, %v300_v32 }
 0x12b   : > { %v357_v48 = vpop.permute.xlu1 %356 }
 0x12c   : > { %v402_v49 = vmul.f32 %v357_v48, %v294_v28 }
 0x12e   : > { %647 = vmatmul.msk.f32.gmra.mxu1 %vm198_vm0, %v402_v49 }
 0x131   : > { %v377_v58 = vpop.permute.xlu2 %376 }
 0x132   : > { %v412_v59 = vmul.f32 %v377_v58, %v324_v37 }
 0x133   : > { %v359_v50 = vpop.permute.xlu1 %358 }
 0x134   : > { %v403_v51 = vmul.f32 %v359_v50, %v297_v30 }
 0x136   : > { %648 = vmatmul.msk.f32.gmra.mxu1 %vm198_vm0, %v403_v51 }
 0x139   : > { %v367_v62 = vpop.permute.xlu2 %366 }
 0x13a   : > { %v407_v1 = vmul.f32 %v367_v62, %v818_v25 }
 0x13e   : > { %649 = vmatmul.msk.f32.gmra.mxu1 %vm198_vm0, %v404_v53 }
 0x141   : > { %v375_v54 = vpop.permute.xlu0 %374  ;;  %v383_v6 = vpop.permute.xlu2 %382 }
 0x142   : > { %v411_v55 = vmul.f32 %v375_v54, %v321_v33  ;;  %v415_v8 = vmul.f32 %v383_v6, %v333_v40 }
 0x143   : > { %v363_v56 = vpop.permute.xlu1 %362 }
 0x144   : > { %v405_v57 = vmul.f32 %v363_v56, %v303_v34  ;;  %656 = vmatmul.msk.f32.gmra.mxu3 %vm198_vm0, %v411_v55 }
 0x146   : > { %650 = vmatmul.msk.f32.gmra.mxu1 %vm198_vm0, %v405_v57 }
 0x14b   : > { %v365_v60 = vpop.permute.xlu0 %364 }
 0x14c   : > { %v406_v61 = vmul.f32 %v365_v60, %v306_v38  ;;  %657 = vmatmul.msk.f32.gmra.mxu3 %vm198_vm0, %v412_v59 }
 0x14e   : > { %651 = vmatmul.msk.f32.gmra.mxu1 %vm198_vm0, %v406_v61 }
 0x151   : > { %v379_v63 = vpop.permute.xlu1 %378 }
 0x152   : > { %v413_v0 = vmul.f32 %v379_v63, %v327_v39 }
 0x154   : > { %658 = vmatmul.msk.f32.gmra.mxu3 %vm198_vm0, %v413_v0 }
 0x156   : > { %652 = vmatmul.msk.f32.gmra.mxu1 %vm198_vm0, %v407_v1 }
 0x159   : > { %v369_v2 = vpop.permute.xlu1 %368 }
 0x15a   : > { %v381_v3 = vpop.permute.xlu0 %380  ;;  %v408_v5 = vmul.f32 %v369_v2, %v821_v27 }
 0x15b   : > { %v414_v4 = vmul.f32 %v381_v3, %v330_v41 }
 0x15d   : > { %659 = vmatmul.msk.f32.gmra.mxu3 %vm198_vm0, %v414_v4 }
 0x15e   : > { %653 = vmatmul.msk.f32.gmra.mxu1 %vm198_vm0, %v408_v5 }
 0x162   : > { %v371_v7 = vpop.permute.xlu0 %370 }
 0x163   : > { %v409_v9 = vmul.f32 %v371_v7, %v824_v29 }
 0x165   : > { %660 = vmatmul.msk.f32.gmra.mxu3 %vm198_vm0, %v415_v8 }
 0x166   : > { %654 = vmatmul.msk.f32.gmra.mxu1 %vm198_vm0, %v409_v9 }
 0x19b   : > { %v489_v10 = vpop.f32.mrf.mxu1 }
 0x19c   : > { %538 = vst.msk [vmem:[%s876_s16] sm:$0xff] %vm537_vm1, %v489_v10 }
 0x1a3   : > { %v492_v11 = vpop.f32.mrf.mxu1 }
 0x1a4   : > { %539 = vst.msk [vmem:[%s876_s16 + $0x8] sm:$0xff] %vm537_vm1, %v492_v11 }
 0x1a7   : > { %v519_v12 = vpop.f32.mrf.mxu3 }
 0x1a8   : > { %548 = vst.msk [vmem:[%s876_s16 + $0x50] sm:$0xff] %vm537_vm1, %v519_v12 }
 0x1ab   : > { %v495_v13 = vpop.f32.mrf.mxu1 }
 0x1ac   : > { %540 = vst.msk [vmem:[%s876_s16 + $0x10] sm:$0xff] %vm537_vm1, %v495_v13 }
 0x1b3   : > { %v498_v14 = vpop.f32.mrf.mxu1 }
 0x1b4   : > { %541 = vst.msk [vmem:[%s876_s16 + $0x18] sm:$0xff] %vm537_vm1, %v498_v14 }
 0x1bb   : > { %v501_v15 = vpop.f32.mrf.mxu1 }
 0x1bc   : > { %542 = vst.msk [vmem:[%s876_s16 + $0x20] sm:$0xff] %vm537_vm1, %v501_v15 }
 0x1c3   : > { %v504_v16 = vpop.f32.mrf.mxu1 }
 0x1c4   : > { %543 = vst.msk [vmem:[%s876_s16 + $0x28] sm:$0xff] %vm537_vm1, %v504_v16 }
 0x1c7   : > { %v522_v17 = vpop.f32.mrf.mxu3 }
 0x1c8   : > { %549 = vst.msk [vmem:[%s876_s16 + $0x58] sm:$0xff] %vm537_vm1, %v522_v17 }
 0x1cb   : > { %v507_v18 = vpop.f32.mrf.mxu1 }
 0x1cc   : > { %544 = vst.msk [vmem:[%s876_s16 + $0x30] sm:$0xff] %vm537_vm1, %v507_v18 }
 0x1cf   : > { %v525_v19 = vpop.f32.mrf.mxu3 }
 0x1d0   : > { %550 = vst.msk [vmem:[%s876_s16 + $0x60] sm:$0xff] %vm537_vm1, %v525_v19 }
 0x1d3   : > { %v510_v20 = vpop.f32.mrf.mxu1 }
 0x1d4   : > { %545 = vst.msk [vmem:[%s876_s16 + $0x38] sm:$0xff] %vm537_vm1, %v510_v20 }
 0x1d7   : > { %v528_v21 = vpop.f32.mrf.mxu3 }
 0x1d8   : > { %551 = vst.msk [vmem:[%s876_s16 + $0x68] sm:$0xff] %vm537_vm1, %v528_v21 }
 0x1db   : > { %v513_v22 = vpop.f32.mrf.mxu1 }
 0x1dc   : > { %546 = vst.msk [vmem:[%s876_s16 + $0x40] sm:$0xff] %vm537_vm1, %v513_v22 }
 0x1e0   : > { %v531_v23 = vpop.f32.mrf.mxu3 }
 0x1e1   : > { %552 = vst.msk [vmem:[%s876_s16 + $0x70] sm:$0xff] %vm537_vm1, %v531_v23 }
 0x1e3   : > { %v516_v24 = vpop.f32.mrf.mxu1 }
 0x1e4   : > { %547 = vst.msk [vmem:[%s876_s16 + $0x48] sm:$0xff] %vm537_vm1, %v516_v24 }
 0x1e8   : > { %v534_v25 = vpop.f32.mrf.mxu3 }
 0x1e9   : > { %553 = vst.msk [vmem:[%s876_s16 + $0x78] sm:$0xff] %vm537_vm1, %v534_v25 }
 0x1ea PF: > { %s13_s12 = sadd.s32 1, %s696_s12  }
 0x1eb   : > { %p10_p4 = scmp.ge.s32.totalorder %s13_s12, 4  }
 0x1ed   :  { %12 = sbr.rel (!%p10_p4) target bundleno = 1 (0x1), region = 62 }

</bundles_post_ra>
